<compile_context>
chip_gen: v7x
topology: tpu7x:2x2x1
jax: 0.10.0
libtpu: 0.0.40
codegen_flags: <defaults>
</compile_context>

<pallas_src>
import functools

import jax
import jax.numpy as jnp
from jax import lax
from jax.experimental import pallas as pl
from jax.experimental.pallas import tpu as pltpu

EPS = 1e-06

# Per-input-buffer VMEM budget (bytes).  With 2-deep double buffering plus the
# f32 elementwise intermediates this stays well under the 32 MiB limit below
# (and under v7x's 64 MiB physical VMEM), while tiles are still >= 4 MiB for
# large shapes so grid-step overhead is negligible.
_VMEM_INPUT_BUDGET = 4 * 1024 * 1024
# Keep at least this many grid steps (when B*C allows) so the "parallel" axis
# can be sharded across the 2 TensorCores on v7x.
_MIN_GRID_STEPS = 4


def _round_up(n: int, m: int) -> int:
    return ((n + m - 1) // m) * m


def _cdiv(a: int, b: int) -> int:
    return (a + b - 1) // b


def _make_gem_kernel(hw_true: int, eps: float, compute_dtype):
    """Single-pass kernel: one block spans the full spatial extent."""
    inv_hw = 1.0 / float(hw_true)

    def kernel(p_ref, x_ref, o_ref):
        # p_ref: SMEM (1,) f32; x_ref: VMEM (tile_bc, HW); o_ref: VMEM (tile_bc, 1).
        p = p_ref[0]
        x = x_ref[...].astype(compute_dtype)          # bf16 stays bf16 (EUP packed)
        xc = jnp.maximum(x, eps)                      # clamp(min=eps) -> > 0
        xp = jnp.exp(p.astype(compute_dtype) * jnp.log(xc))   # x**p on the EUP
        s = jnp.sum(xp.astype(jnp.float32), axis=-1, keepdims=True)
        m = s * inv_hw                                # full-spatial average pool
        o_ref[...] = jnp.exp(jnp.log(m) * (1.0 / p)).astype(o_ref.dtype)

    return kernel


def _make_gem_kernel_hw_tiled(hw_true: int, tile_hw: int, eps: float, compute_dtype):
    """Fallback for very large H*W: second ("arbitrary") grid axis over H*W."""
    inv_hw = 1.0 / float(hw_true)
    ragged = (hw_true % tile_hw) != 0

    def kernel(p_ref, x_ref, o_ref, acc_ref):
        j = pl.program_id(1)

        @pl.when(j == 0)
        def _():
            acc_ref[...] = jnp.zeros_like(acc_ref)

        p = p_ref[0]
        x = x_ref[...].astype(compute_dtype)
        xc = jnp.maximum(x, eps)
        xp = jnp.exp(p.astype(compute_dtype) * jnp.log(xc)).astype(jnp.float32)
        if ragged:
            # Mask lanes past the true spatial extent in the last HW block.
            lane = lax.broadcasted_iota(jnp.int32, xp.shape, 1)
            xp = jnp.where(j * tile_hw + lane < hw_true, xp, 0.0)
        acc_ref[...] += jnp.sum(xp, axis=-1, keepdims=True)

        @pl.when(j == pl.num_programs(1) - 1)
        def _():
            m = acc_ref[...] * inv_hw
            o_ref[...] = jnp.exp(jnp.log(m) * (1.0 / p)).astype(o_ref.dtype)

    return kernel


@functools.partial(jax.jit, static_argnames=("eps",))
def gem_pallas(x: jax.Array, p: jax.Array, eps: float = EPS) -> jax.Array:
    """GeM pooling.  x: (B, C, H, W), p: (1,) float32.  Returns (B, C, 1, 1)."""
    B, C, H, W = x.shape
    BC, HW = B * C, H * W
    itemsize = jnp.dtype(x.dtype).itemsize
    compute_dtype = jnp.bfloat16 if x.dtype == jnp.bfloat16 else jnp.float32

    x2d = x.reshape(BC, HW)                 # no padding, no extra HBM traffic
    p32 = p.astype(jnp.float32).reshape(1)

    hw_lanes = _round_up(HW, 128)           # lane-padded in-VMEM row footprint
    per_row_bytes = hw_lanes * itemsize

    out_shape = jax.ShapeDtypeStruct((BC, 1), x.dtype)
    cost = pl.CostEstimate(
        flops=3 * BC * HW,
        transcendentals=2 * BC * HW + 2 * BC,
        bytes_accessed=BC * HW * itemsize + BC * itemsize,
    )
    p_spec = pl.BlockSpec(memory_space=pltpu.SMEM)   # scalar exponent in SMEM

    if per_row_bytes * 8 <= _VMEM_INPUT_BUDGET:
        # ---------------- single pass over the full spatial extent ----------------
        tile_bc = (_VMEM_INPUT_BUDGET // per_row_bytes) // 8 * 8
        # Keep >= _MIN_GRID_STEPS steps for megacore balance when possible.
        tile_bc = min(tile_bc, _round_up(_cdiv(BC, _MIN_GRID_STEPS), 8))
        if BC <= 8:
            tile_bc = BC                     # full-extent block is always legal
        else:
            tile_bc = max(8, min(tile_bc, (BC // 8) * 8))
        grid = (_cdiv(BC, tile_bc),)

        in_tile_bytes = _round_up(tile_bc, 8) * hw_lanes * itemsize
        f32_tile_bytes = _round_up(tile_bc, 8) * hw_lanes * 4
        vmem_limit = 2 * in_tile_bytes + 4 * f32_tile_bytes + (2 << 20)
        vmem_limit = int(max(min(vmem_limit, 32 << 20), 8 << 20))

        out2d = pl.pallas_call(
            _make_gem_kernel(HW, eps, compute_dtype),
            out_shape=out_shape,
            grid=grid,
            in_specs=[
                p_spec,
                pl.BlockSpec((tile_bc, HW), lambda i: (i, 0)),   # last dim = full HW
            ],
            out_specs=pl.BlockSpec((tile_bc, 1), lambda i: (i, 0)),
            compiler_params=pltpu.CompilerParams(
                dimension_semantics=("parallel",),
                vmem_limit_bytes=vmem_limit,
            ),
            cost_estimate=cost,
        )(p32, x2d)
    else:
        # -------- very large H*W: tile the spatial axis too (reduction axis) -------
        tile_bc = 8 if BC >= 8 else BC
        tile_hw = (_VMEM_INPUT_BUDGET // (max(tile_bc, 8) * itemsize)) // 128 * 128
        tile_hw = max(128, min(tile_hw, hw_lanes))
        grid = (_cdiv(BC, tile_bc), _cdiv(HW, tile_hw))

        in_tile_bytes = _round_up(tile_bc, 8) * tile_hw * itemsize
        f32_tile_bytes = _round_up(tile_bc, 8) * tile_hw * 4
        vmem_limit = 2 * in_tile_bytes + 4 * f32_tile_bytes + (2 << 20)
        vmem_limit = int(max(min(vmem_limit, 32 << 20), 8 << 20))

        out2d = pl.pallas_call(
            _make_gem_kernel_hw_tiled(HW, tile_hw, eps, compute_dtype),
            out_shape=out_shape,
            grid=grid,
            in_specs=[
                p_spec,
                pl.BlockSpec((tile_bc, tile_hw), lambda i, j: (i, j)),
            ],
            out_specs=pl.BlockSpec((tile_bc, 1), lambda i, j: (i, 0)),
            scratch_shapes=[pltpu.VMEM((tile_bc, 1), jnp.float32)],
            compiler_params=pltpu.CompilerParams(
                dimension_semantics=("parallel", "arbitrary"),
                vmem_limit_bytes=vmem_limit,
            ),
            cost_estimate=cost,
        )(p32, x2d)

    return out2d.reshape(B, C, 1, 1)


if __name__ == "__main__":
    key = jax.random.PRNGKey(0)
    B, C, H, W = 2, 4, 16, 16
    x = jax.random.normal(key, (B, C, H, W), dtype=jnp.float32)

    # Deterministic parameter init matching GeM.__init__: p = ones(1) * 3
    p = jnp.ones((1,), dtype=jnp.float32) * 3.0

    out = gem_pallas(x, p)
    jax.block_until_ready(out)

    # Sanity check against a pure-JAX reference.
    ref = jnp.power(
        jnp.mean(jnp.power(jnp.maximum(x, EPS), p[0]), axis=(-2, -1), keepdims=True),
        1.0 / p[0],
    )
    assert out.shape == (B, C, 1, 1)
    assert jnp.allclose(out, ref, rtol=1e-4, atol=1e-5)

    print("KERNEL_OK")
</pallas_src>

<mosaic_0001>
module attributes {stable_mosaic.version = 11 : i64} {
  func.func @kernel(%arg0: i32, %arg1: memref<1xf32, #tpu.memory_space<smem>>, %arg2: memref<8x256xf32, #tpu.memory_space<vmem>>, %arg3: memref<8x1xf32, #tpu.memory_space<vmem>>) attributes {dimension_semantics = [#tpu.dimension_semantics<parallel>], iteration_bounds = array<i64: 1>, scalar_prefetch = 0 : i64, scratch_operands = 0 : i64, tpu.core_type = #tpu.core_type<tc>, window_params = [{transform_indices = @transform_0, window_bounds = array<i64: 1>}, {transform_indices = @transform_1, window_bounds = array<i64: 8, 256>}, {transform_indices = @transform_2, window_bounds = array<i64: 8, 1>}]} {
    %c0 = arith.constant 0 : index
    %0 = memref.load %arg1[%c0] : memref<1xf32, #tpu.memory_space<smem>>
    %c0_0 = arith.constant 0 : index
    %c0_1 = arith.constant 0 : index
    %1 = vector.load %arg2[%c0_0, %c0_1] : memref<8x256xf32, #tpu.memory_space<vmem>>, vector<8x256xf32>
    %cst = arith.constant 9.99999997E-7 : f32
    %2 = vector.broadcast %cst : f32 to vector<8x256xf32>
    %3 = arith.maximumf %1, %2 : vector<8x256xf32>
    %4 = math.log %3 : vector<8x256xf32>
    %5 = vector.broadcast %0 : f32 to vector<8x256xf32>
    %6 = arith.mulf %5, %4 : vector<8x256xf32>
    %7 = math.exp %6 : vector<8x256xf32>
    %cst_2 = arith.constant dense<0.000000e+00> : vector<8xf32>
    %8 = vector.multi_reduction <add>, %7, %cst_2 [1] : vector<8x256xf32> to vector<8xf32>
    %9 = vector.shape_cast %8 : vector<8xf32> to vector<8x1xf32>
    %cst_3 = arith.constant 3.906250e-03 : f32
    %10 = vector.broadcast %cst_3 : f32 to vector<8x1xf32>
    %11 = arith.mulf %9, %10 : vector<8x1xf32>
    %12 = math.log %11 : vector<8x1xf32>
    %cst_4 = arith.constant 1.000000e+00 : f32
    %13 = arith.divf %cst_4, %0 : f32
    %14 = vector.broadcast %13 : f32 to vector<8x1xf32>
    %15 = arith.mulf %12, %14 : vector<8x1xf32>
    %16 = math.exp %15 : vector<8x1xf32>
    %c0_5 = arith.constant 0 : index
    %c0_6 = arith.constant 0 : index
    %17 = vector.load %arg3[%c0_5, %c0_6] : memref<8x1xf32, #tpu.memory_space<vmem>>, vector<8x1xf32>
    tpu.vector_store %arg3[%c0_5, %c0_6], %16 {strides = array<i32>} : memref<8x1xf32, #tpu.memory_space<vmem>>, vector<8x1xf32>,
    return
  }
  func.func @transform_0(%arg0: i32) -> i32 {
    %c0_i32 = arith.constant 0 : i32
    %c0_i32_0 = arith.constant 0 : i32
    return %c0_i32 : i32
  }
  func.func @transform_1(%arg0: i32) -> (i32, i32) {
    %c0_i32 = arith.constant 0 : i32
    %c0_i32_0 = arith.constant 0 : i32
    return %arg0, %c0_i32 : i32, i32
  }
  func.func @transform_2(%arg0: i32) -> (i32, i32) {
    %c0_i32 = arith.constant 0 : i32
    %c0_i32_0 = arith.constant 0 : i32
    return %arg0, %c0_i32 : i32, i32
  }
}

</mosaic_0001>

<bundles_post_ra>
// kernel: gem_pallas.1
= control target key start
LH: loop header
LB: loop body
LE: loop exit
PB: predicated region body
PF: predicated region fallthrough
CT: control target
= control target key end

     0   :  { %vm41_vm0 = vcmask 7168   ;;  %s90_s0 = inlined_call_operand.<no memory space> [shape: f32[1], index: 0, kind: input, shape index: {}]   ;;  %s91_s1 = inlined_call_operand.vmem [shape: f32[8,256], index: 1, kind: input, shape index: {}]   ;;  %s92_s2 = inlined_call_operand.vmem [shape: f32[8,1], index: 2, kind: output, shape index: {}]  }
   0x1   :  { %v13_v0 = vld [vmem:[%s91_s1] sm:$0xff]  ;;  %v14_v1 = vld [vmem:[%s91_s1 + $0x8] sm:$0xff]  ;;  %v21_v2 = vstv %s90_s0 }
   0x2   :  { %v15_v3 = vmax.f32 %v13_v0, 1e-06  ;;  %v16_v4 = vmax.f32 %v14_v1, 1e-06  ;;  %49 = vrcp.f32 %v21_v2 }
   0x4   :  { %51 = vlog2.f32 %v15_v3 }
   0x5   :  { %53 = vlog2.f32 %v16_v4 }
   0xc   :  { %v50_v5 = vpop.eup %49 }
   0xd   :  { %47 = vpush %v50_v5 }
   0xe   :  { %v52_v6 = vpop.eup %51 }
   0xf   :  { %v54_v7 = vpop.eup %53  ;;  %v18_v8 = vmul.f32 0.6931472, %v52_v6 }
  0x10   :  { %v20_v9 = vmul.f32 0.6931472, %v54_v7 }
  0x11   :  { %v22_v10 = vmul.f32 %v21_v2, %v18_v8 }
  0x12   :  { %v23_v11 = vmul.f32 %v21_v2, %v20_v9 }
  0x13   :  { %v24_v12 = vmul.f32 1.442695, %v22_v10 }
  0x14   :  { %v26_v13 = vmul.f32 1.442695, %v23_v11 }
  0x15   :  { %55 = vpow2.f32 %v24_v12 }
  0x16   :  { %57 = vpow2.f32 %v26_v13 }
  0x1f   :  { %v56_v14 = vpop.eup %55 }
  0x20   :  { %v58_v15 = vpop.eup %57 }
  0x21   :  { %v28_v16 = vadd.f32 %v58_v15, %v56_v14 }
  0x23   :  { %29 = vadd.xlane.f32.xlu0 %v28_v16 }
  0x3e   :  { %s48_s0 = spop %47 }
  0x3f   :  { %v37_v20 = vstv %s48_s0 }
  0xb0   :  { %v30_v17 = vpop.xlane.xlu0 %29 }
  0xb1   :  { %v31_v18 = vmul.f32 0.00390625, %v30_v17 }
  0xb3   :  { %59 = vlog2.f32 %v31_v18 }
  0xbd   :  { %v60_v19 = vpop.eup %59 }
  0xbe   :  { %v33_v21 = vmul.f32 0.6931472, %v60_v19 }
  0xc0   :  { %v38_v22 = vmul.f32 %v37_v20, %v33_v21 }
  0xc2   :  { %v39_v23 = vmul.f32 1.442695, %v38_v22 }
  0xc4   :  { %61 = vpow2.f32 %v39_v23 }
  0xce   :  { %v62_v24 = vpop.eup %61 }
  0xcf   :  { %42 = vst.msk [vmem:[%s92_s2] sm:$0xff] %vm41_vm0, %v62_v24 }

</bundles_post_ra>
